<compile_context>
chip_gen: v5e
topology: v5e:2x2
jax: 0.10.0
libtpu: 0.0.40
codegen_flags: <defaults>
</compile_context>

<pallas_src>
import jax
import jax.numpy as jnp
from jax.experimental import pallas as pl
from jax.experimental.pallas import tpu as pltpu

BN_EPS = 1e-5
LANE = 128
SUBLANE = 8


def _round_up(x, m):
    return (x + m - 1) // m * m


# --------------------------------------------------------------------------- #
# Kernel: three matmul + bias + activation stages on one batch tile.
# --------------------------------------------------------------------------- #
def _mlp_kernel(x_ref, w1_ref, b1_ref, w2_ref, b2_ref, w3_ref, b3_ref, o_ref):
    x = x_ref[...]                                                    # [TB, D_in]

    # fc1 + sigmoid          (BN1 is folded into w2/b2)
    h = jnp.dot(x, w1_ref[...], preferred_element_type=jnp.float32) + b1_ref[...]
    h = jax.nn.sigmoid(h)                                             # EUP exp + vrcp

    # (bn1∘fc2 folded) + tanh (BN2 is folded into w3/b3)
    h = jnp.dot(h, w2_ref[...], preferred_element_type=jnp.float32) + b2_ref[...]
    h = jnp.tanh(h)                                                   # EUP

    # (bn2∘fc3 folded) + relu
    y = jnp.dot(h, w3_ref[...], preferred_element_type=jnp.float32) + b3_ref[...]
    o_ref[...] = jnp.maximum(y, 0.0)


# --------------------------------------------------------------------------- #
# Wrapper-side parameter preparation: fold eval BN into the next Linear and
# zero-pad the lane dims to multiples of 128.  Padded lanes carry exact zeros
# through every stage (sigmoid(0)=0.5 hits zero-padded W2 rows, etc.), so the
# sliced result is identical to the unpadded computation.
# --------------------------------------------------------------------------- #
def fold_and_pad_params(p):
    s1 = p["g1"] * jax.lax.rsqrt(p["v1"] + BN_EPS)        # (1, H)
    t1 = p["be1"] - p["m1"] * s1
    s2 = p["g2"] * jax.lax.rsqrt(p["v2"] + BN_EPS)        # (1, H2)
    t2 = p["be2"] - p["m2"] * s2

    w1, b1 = p["w1"], p["b1"]
    w2f = s1.T * p["w2"]                                  # bn1 folded into fc2
    b2f = t1 @ p["w2"] + p["b2"]
    w3f = s2.T * p["w3"]                                  # bn2 folded into fc3
    b3f = t2 @ p["w3"] + p["b3"]

    d_in, h = w1.shape
    h2 = w2f.shape[1]
    h_pad = _round_up(h, LANE)
    h2_pad = _round_up(h2, LANE)
    out_pad = LANE                                        # lane-dense output slab

    def pad2(a, rows, cols):
        return jnp.pad(a, ((0, rows - a.shape[0]), (0, cols - a.shape[1])))

    return dict(
        w1=pad2(w1, d_in, h_pad),  b1=pad2(b1, 1, h_pad),
        w2=pad2(w2f, h_pad, h2_pad), b2=pad2(b2f, 1, h2_pad),
        w3=pad2(w3f, h2_pad, out_pad), b3=pad2(b3f, 1, out_pad),
    )


def deep_regression_forward(x, folded, *, max_batch_tile=512):
    """x: [B, D_in] float32.  folded: output of fold_and_pad_params."""
    B, d_in = x.shape
    h_pad = folded["w1"].shape[1]
    h2_pad = folded["w2"].shape[1]
    out_pad = folded["w3"].shape[1]

    # Batch tile: multiple of 8 sublanes, up to 512 rows per grid step.
    tb = min(max_batch_tile, _round_up(B, SUBLANE))
    b_pad = _round_up(B, tb)
    if b_pad != B:
        x = jnp.pad(x, ((0, b_pad - B), (0, 0)))
    grid_b = b_pad // tb

    def const(shape):
        # Constant index_map: block stays VMEM-resident across the batch grid.
        return pl.BlockSpec(shape, lambda i: (0, 0))

    out = pl.pallas_call(
        _mlp_kernel,
        out_shape=jax.ShapeDtypeStruct((b_pad, out_pad), jnp.float32),
        grid_spec=pltpu.PrefetchScalarGridSpec(
            num_scalar_prefetch=0,
            grid=(grid_b,),
            in_specs=[
                pl.BlockSpec((tb, d_in), lambda i: (i, 0)),   # x tile
                const((d_in, h_pad)),   const((1, h_pad)),    # fc1
                const((h_pad, h2_pad)), const((1, h2_pad)),   # fc2 (+bn1 folded)
                const((h2_pad, out_pad)), const((1, out_pad)),  # fc3 (+bn2 folded)
            ],
            out_specs=pl.BlockSpec((tb, out_pad), lambda i: (i, 0)),
        ),
        compiler_params=pltpu.CompilerParams(
            dimension_semantics=("parallel",),          # shards batch across TCs on v7x
            vmem_limit_bytes=64 * 1024 * 1024,
        ),
    )(x, folded["w1"], folded["b1"], folded["w2"], folded["b2"],
      folded["w3"], folded["b3"])

    return out[:B, :1]


# --------------------------------------------------------------------------- #
# Deterministic synthetic parameters matching the PyTorch module shapes.
# --------------------------------------------------------------------------- #
def init_params(key, input_dims, hidden_dims):
    h2 = hidden_dims // 2
    ks = jax.random.split(key, 10)

    def linear(kw, kb, fan_in, fan_out):
        bound = 1.0 / jnp.sqrt(float(fan_in))
        w = jax.random.uniform(kw, (fan_in, fan_out), jnp.float32, -bound, bound)
        b = jax.random.uniform(kb, (1, fan_out), jnp.float32, -bound, bound)
        return w, b

    w1, b1 = linear(ks[0], ks[1], input_dims, hidden_dims)
    w2, b2 = linear(ks[2], ks[3], hidden_dims, h2)
    w3, b3 = linear(ks[4], ks[5], h2, 1)

    g1 = 1.0 + 0.1 * jax.random.normal(ks[6], (1, hidden_dims), jnp.float32)
    be1 = 0.1 * jax.random.normal(ks[7], (1, hidden_dims), jnp.float32)
    m1 = 0.05 * jax.random.normal(ks[8], (1, hidden_dims), jnp.float32)
    v1 = 1.0 + 0.1 * jnp.abs(jax.random.normal(ks[9], (1, hidden_dims), jnp.float32))

    kk = jax.random.split(ks[9], 4)
    g2 = 1.0 + 0.1 * jax.random.normal(kk[0], (1, h2), jnp.float32)
    be2 = 0.1 * jax.random.normal(kk[1], (1, h2), jnp.float32)
    m2 = 0.05 * jax.random.normal(kk[2], (1, h2), jnp.float32)
    v2 = 1.0 + 0.1 * jnp.abs(jax.random.normal(kk[3], (1, h2), jnp.float32))

    return dict(w1=w1, b1=b1, g1=g1, be1=be1, m1=m1, v1=v1,
                w2=w2, b2=b2, g2=g2, be2=be2, m2=m2, v2=v2,
                w3=w3, b3=b3)


def reference_forward(x, p):
    """Plain-JAX reference of the eval-mode PyTorch forward (unfolded BN)."""
    h = x @ p["w1"] + p["b1"]
    h = jax.nn.sigmoid(h)
    h = (h - p["m1"]) / jnp.sqrt(p["v1"] + BN_EPS) * p["g1"] + p["be1"]
    h = h @ p["w2"] + p["b2"]
    h = jnp.tanh(h)
    h = (h - p["m2"]) / jnp.sqrt(p["v2"] + BN_EPS) * p["g2"] + p["be2"]
    y = h @ p["w3"] + p["b3"]
    return jnp.maximum(y, 0.0)


if __name__ == "__main__":
    B, INPUT_DIMS, HIDDEN_DIMS = 8, 16, 32

    key = jax.random.PRNGKey(0)
    kx, kp = jax.random.split(key)
    x = jax.random.normal(kx, (B, INPUT_DIMS), jnp.float32)
    params = init_params(kp, INPUT_DIMS, HIDDEN_DIMS)

    folded = fold_and_pad_params(params)
    out = deep_regression_forward(x, folded)
    out = jax.block_until_ready(out)

    ref = reference_forward(x, params)
    assert out.shape == (B, 1), out.shape
    assert jnp.allclose(out, ref, atol=1e-5, rtol=1e-5), (
        f"max abs err {jnp.max(jnp.abs(out - ref))}")

    print("KERNEL_OK")
</pallas_src>

<mosaic_0001>
module attributes {stable_mosaic.version = 11 : i64} {
  func.func @_mlp_kernel(%arg0: i32, %arg1: memref<8x16xf32, #tpu.memory_space<vmem>>, %arg2: memref<16x128xf32, #tpu.memory_space<vmem>>, %arg3: memref<1x128xf32, #tpu.memory_space<vmem>>, %arg4: memref<128x128xf32, #tpu.memory_space<vmem>>, %arg5: memref<1x128xf32, #tpu.memory_space<vmem>>, %arg6: memref<128x128xf32, #tpu.memory_space<vmem>>, %arg7: memref<1x128xf32, #tpu.memory_space<vmem>>, %arg8: memref<8x128xf32, #tpu.memory_space<vmem>>) attributes {dimension_semantics = [#tpu.dimension_semantics<parallel>], iteration_bounds = array<i64: 1>, scalar_prefetch = 0 : i64, scratch_operands = 0 : i64, tpu.core_type = #tpu.core_type<tc>, window_params = [{transform_indices = @transform_0, window_bounds = array<i64: 8, 16>}, {pipeline_mode = #tpu.pipeline_mode<synchronous>, transform_indices = @transform_1, window_bounds = array<i64: 16, 128>}, {pipeline_mode = #tpu.pipeline_mode<synchronous>, transform_indices = @transform_2, window_bounds = array<i64: 1, 128>}, {pipeline_mode = #tpu.pipeline_mode<synchronous>, transform_indices = @transform_3, window_bounds = array<i64: 128, 128>}, {pipeline_mode = #tpu.pipeline_mode<synchronous>, transform_indices = @transform_4, window_bounds = array<i64: 1, 128>}, {pipeline_mode = #tpu.pipeline_mode<synchronous>, transform_indices = @transform_5, window_bounds = array<i64: 128, 128>}, {pipeline_mode = #tpu.pipeline_mode<synchronous>, transform_indices = @transform_6, window_bounds = array<i64: 1, 128>}, {transform_indices = @transform_7, window_bounds = array<i64: 8, 128>}]} {
    %c0 = arith.constant 0 : index
    %c0_0 = arith.constant 0 : index
    %0 = vector.load %arg1[%c0, %c0_0] : memref<8x16xf32, #tpu.memory_space<vmem>>, vector<8x16xf32>
    %c0_1 = arith.constant 0 : index
    %c0_2 = arith.constant 0 : index
    %1 = vector.load %arg2[%c0_1, %c0_2] : memref<16x128xf32, #tpu.memory_space<vmem>>, vector<16x128xf32>
    %cst = arith.constant dense<0.000000e+00> : vector<8x128xf32>
    %2 = tpu.matmul %0, %1, %cst {dimension_numbers = #tpu.dot_dimension_numbers<[1], [0], [0], [1], [0, 0, 1, 1], [], []>} : vector<8x16xf32>, vector<16x128xf32>, vector<8x128xf32> -> vector<8x128xf32>
    %c0_3 = arith.constant 0 : index
    %c0_4 = arith.constant 0 : index
    %3 = vector.load %arg3[%c0_3, %c0_4] : memref<1x128xf32, #tpu.memory_space<vmem>>, vector<1x128xf32>
    %4 = vector.broadcast %3 : vector<1x128xf32> to vector<8x128xf32>
    %5 = arith.addf %2, %4 : vector<8x128xf32>
    %6 = arith.negf %5 : vector<8x128xf32>
    %7 = math.exp %6 : vector<8x128xf32>
    %cst_5 = arith.constant 1.000000e+00 : f32
    %8 = vector.broadcast %cst_5 : f32 to vector<8x128xf32>
    %9 = arith.addf %8, %7 : vector<8x128xf32>
    %10 = arith.divf %8, %9 : vector<8x128xf32>
    %c0_6 = arith.constant 0 : index
    %c0_7 = arith.constant 0 : index
    %11 = vector.load %arg4[%c0_6, %c0_7] : memref<128x128xf32, #tpu.memory_space<vmem>>, vector<128x128xf32>
    %cst_8 = arith.constant dense<0.000000e+00> : vector<8x128xf32>
    %12 = tpu.matmul %10, %11, %cst_8 {dimension_numbers = #tpu.dot_dimension_numbers<[1], [0], [0], [1], [0, 0, 1, 1], [], []>} : vector<8x128xf32>, vector<128x128xf32>, vector<8x128xf32> -> vector<8x128xf32>
    %c0_9 = arith.constant 0 : index
    %c0_10 = arith.constant 0 : index
    %13 = vector.load %arg5[%c0_9, %c0_10] : memref<1x128xf32, #tpu.memory_space<vmem>>, vector<1x128xf32>
    %14 = vector.broadcast %13 : vector<1x128xf32> to vector<8x128xf32>
    %15 = arith.addf %12, %14 : vector<8x128xf32>
    %16 = math.tanh %15 : vector<8x128xf32>
    %c0_11 = arith.constant 0 : index
    %c0_12 = arith.constant 0 : index
    %17 = vector.load %arg6[%c0_11, %c0_12] : memref<128x128xf32, #tpu.memory_space<vmem>>, vector<128x128xf32>
    %cst_13 = arith.constant dense<0.000000e+00> : vector<8x128xf32>
    %18 = tpu.matmul %16, %17, %cst_13 {dimension_numbers = #tpu.dot_dimension_numbers<[1], [0], [0], [1], [0, 0, 1, 1], [], []>} : vector<8x128xf32>, vector<128x128xf32>, vector<8x128xf32> -> vector<8x128xf32>
    %c0_14 = arith.constant 0 : index
    %c0_15 = arith.constant 0 : index
    %19 = vector.load %arg7[%c0_14, %c0_15] : memref<1x128xf32, #tpu.memory_space<vmem>>, vector<1x128xf32>
    %20 = vector.broadcast %19 : vector<1x128xf32> to vector<8x128xf32>
    %21 = arith.addf %18, %20 : vector<8x128xf32>
    %cst_16 = arith.constant 0.000000e+00 : f32
    %22 = vector.broadcast %cst_16 : f32 to vector<8x128xf32>
    %23 = arith.maximumf %21, %22 : vector<8x128xf32>
    %c0_17 = arith.constant 0 : index
    %c0_18 = arith.constant 0 : index
    %24 = vector.load %arg8[%c0_17, %c0_18] : memref<8x128xf32, #tpu.memory_space<vmem>>, vector<8x128xf32>
    tpu.vector_store %arg8[%c0_17, %c0_18], %23 {strides = array<i32>} : memref<8x128xf32, #tpu.memory_space<vmem>>, vector<8x128xf32>,
    return
  }
  func.func @transform_0(%arg0: i32) -> (i32, i32) {
    %c0_i32 = arith.constant 0 : i32
    %c0_i32_0 = arith.constant 0 : i32
    return %arg0, %c0_i32 : i32, i32
  }
  func.func @transform_1(%arg0: i32) -> (i32, i32) {
    %c0_i32 = arith.constant 0 : i32
    %c0_i32_0 = arith.constant 0 : i32
    %c0_i32_1 = arith.constant 0 : i32
    return %c0_i32, %c0_i32_0 : i32, i32
  }
  func.func @transform_2(%arg0: i32) -> (i32, i32) {
    %c0_i32 = arith.constant 0 : i32
    %c0_i32_0 = arith.constant 0 : i32
    %c0_i32_1 = arith.constant 0 : i32
    return %c0_i32, %c0_i32_0 : i32, i32
  }
  func.func @transform_3(%arg0: i32) -> (i32, i32) {
    %c0_i32 = arith.constant 0 : i32
    %c0_i32_0 = arith.constant 0 : i32
    %c0_i32_1 = arith.constant 0 : i32
    return %c0_i32, %c0_i32_0 : i32, i32
  }
  func.func @transform_4(%arg0: i32) -> (i32, i32) {
    %c0_i32 = arith.constant 0 : i32
    %c0_i32_0 = arith.constant 0 : i32
    %c0_i32_1 = arith.constant 0 : i32
    return %c0_i32, %c0_i32_0 : i32, i32
  }
  func.func @transform_5(%arg0: i32) -> (i32, i32) {
    %c0_i32 = arith.constant 0 : i32
    %c0_i32_0 = arith.constant 0 : i32
    %c0_i32_1 = arith.constant 0 : i32
    return %c0_i32, %c0_i32_0 : i32, i32
  }
  func.func @transform_6(%arg0: i32) -> (i32, i32) {
    %c0_i32 = arith.constant 0 : i32
    %c0_i32_0 = arith.constant 0 : i32
    %c0_i32_1 = arith.constant 0 : i32
    return %c0_i32, %c0_i32_0 : i32, i32
  }
  func.func @transform_7(%arg0: i32) -> (i32, i32) {
    %c0_i32 = arith.constant 0 : i32
    %c0_i32_0 = arith.constant 0 : i32
    return %arg0, %c0_i32 : i32, i32
  }
}

</mosaic_0001>

<bundles_post_ra>
// kernel: tpu_custom_call.1
= control target key start
LH: loop header
LB: loop body
LE: loop exit
PB: predicated region body
PF: predicated region fallthrough
CT: control target
= control target key end

     0   :  { %12 = vsyncpa [#allocation3], 0  ;;  %s457_s0 = inlined_call_operand.hbm [shape: f32[8,16], index: 0, kind: input, shape index: {}]   ;;  %s458_s1 = inlined_call_operand.hbm [shape: f32[16,128], index: 1, kind: input, shape index: {}]   ;;  %s459_s2 = inlined_call_operand.vmem [shape: f32[1,128], index: 2, kind: input, shape index: {}]   ;;  %s460_s3 = inlined_call_operand.hbm [shape: f32[128,128], index: 3, kind: input, shape index: {}]   ;;  %s461_s4 = inlined_call_operand.vmem [shape: f32[1,128], index: 4, kind: input, shape index: {}]   ;;  %s462_s5 = inlined_call_operand.hbm [shape: f32[128,128], index: 5, kind: input, shape index: {}]   ;;  %s463_s6 = inlined_call_operand.vmem [shape: f32[1,128], index: 6, kind: input, shape index: {}]   ;;  %s464_s7 = inlined_call_operand.hbm [shape: f32[8,128], index: 7, kind: output, shape index: {}]  }
   0x1   :  { %13 = vsyncpa [#allocation6], 0 }
   0x2   :  { %14 = vsyncpa [#allocation9], 0  ;;  %s31_s26 = sshll.u32 %s458_s1, 4  ;;  %s32_s26 = int_to_ptr.hbm [resolvable:$true] %s31_s26 }
   0x3   :  { %15 = vsyncpa [#allocation4], 0  ;;  %s386_s27 = smov [#allocation5]   ;;  %s21_s8 = sshll.u32 %s457_s0, 4  ;;  %s22_s8 = int_to_ptr.hbm [resolvable:$true] %s21_s8 }
   0x4   :  { %s33_s28 = sshll.u32 %s386_s27, 4  ;;  %s387_s9 = smov 128   ;;  %s34_s28 = int_to_ptr.vmem [resolvable:$true] %s33_s28 }
   0x5   :  { %s388_s10 = smov 8   ;;  %s389_s11 = smov [#allocation2]  }
   0x6   :  { %39 = dma.hbm_to_vmem [thread:$0]  %s32_s26, 256, %s34_s28, [#allocation6], %s387_s9, %s387_s9, %s388_s10  }
   0x7   :  { %s23_s12 = sshll.u32 %s389_s11, 4  ;;  %s46_s15 = sshll.u32 %s460_s3, 4  ;;  %s24_s12 = int_to_ptr.vmem [resolvable:$true] %s23_s12  ;;  %s47_s15 = int_to_ptr.hbm [resolvable:$true] %s46_s15 }
   0x8   :  { %26 = dma.hbm_to_vmem [thread:$0]  %s22_s8, 128, %s24_s12, [#allocation3]  }
   0x9   :  { %s61_s17 = sshll.u32 %s462_s5, 4  ;;  %s390_s18 = smov [#allocation7]   ;;  %s62_s17 = int_to_ptr.hbm [resolvable:$true] %s61_s17 }
   0xa   :  { %s48_s19 = sshll.u32 %s390_s18, 4  ;;  %s391_s0 = smov [#allocation8]   ;;  %s49_s19 = int_to_ptr.vmem [resolvable:$true] %s48_s19 }
   0xb   :  { %54 = dma.hbm_to_vmem [thread:$0]  %s47_s15, 2048, %s49_s19, [#allocation6], %s387_s9, %s387_s9, %s388_s10  }
   0xc   :  { %s63_s20 = sshll.u32 %s391_s0, 4  ;;  %s64_s20 = int_to_ptr.vmem [resolvable:$true] %s63_s20 }
   0xd   :  { %69 = dma.hbm_to_vmem [thread:$0]  %s62_s17, 2048, %s64_s20, [#allocation9], %s387_s9, %s387_s9, %s388_s10  }
   0xe   :  { %378 = dma.done.wait [#allocation3], 128  }
   0xf   :  { %379 = vsyncadd [#allocation3], 4294967168 }
  0x10   :  { %380 = dma.done.wait [#allocation6], 2304  }
  0x11   :  { %381 = vsyncadd [#allocation6], 4294964992 }
  0x12   :  { %382 = dma.done.wait [#allocation9], 2048  }
  0x13   :  { %383 = vsyncadd [#allocation9], 4294965248  ;;  %v90_v0 = vld [vmem:[#allocation5 + $0x8] sm:$0xff]  ;;  %v89_v1 = vld [vmem:[#allocation5] sm:$0xff]  ;;  %vm95_vm0 = vcmask 130048   ;;  %s392_s24 = smov [#allocation10]  }
  0x14   :  { %113 = vmatpush.msra.mxu0 %v90_v0  ;;  %v88_v2 = vld [vmem:[#allocation2] sm:$0xff]  ;;  %v153_v3 = vld [vmem:[#allocation7 + $0x78] sm:$0xff]  ;;  %v152_v4 = vld [vmem:[#allocation7 + $0x70] sm:$0xff]  ;;  %s226_s25 = sshll.u32 %s392_s24, 4  ;;  %s228_s28 = sshll.u32 %s464_s7, 4  ;;  %s227_s25 = int_to_ptr.vmem [resolvable:$true] %s226_s25  ;;  %s229_s28 = int_to_ptr.hbm [resolvable:$true] %s228_s28 }
  0x15   :  { %158 = vmatpush.msra.mxu1 %v153_v3  ;;  %v151_v5 = vld [vmem:[#allocation7 + $0x68] sm:$0xff]  ;;  %v150_v6 = vld [vmem:[#allocation7 + $0x60] sm:$0xff]  ;;  %v149_v7 = vld [vmem:[#allocation7 + $0x58] sm:$0xff] }
  0x16   :  { %114 = vmatpush.msra.mxu0 %v89_v1  ;;  %v148_v8 = vld [vmem:[#allocation7 + $0x50] sm:$0xff]  ;;  %v147_v9 = vld [vmem:[#allocation7 + $0x48] sm:$0xff]  ;;  %v146_v10 = vld [vmem:[#allocation7 + $0x40] sm:$0xff] }
  0x17   :  { %240 = vmatmul.msk.f32.vlgmr.msra.gmra.mxu0 %vm95_vm0, %v88_v2  ;;  %159 = vmatpush.msra.mxu1 %v152_v4  ;;  %v145_v11 = vld [vmem:[#allocation7 + $0x38] sm:$0xff]  ;;  %v144_v12 = vld [vmem:[#allocation7 + $0x30] sm:$0xff]  ;;  %v143_v13 = vld [vmem:[#allocation7 + $0x28] sm:$0xff] }
  0x18   :  { %v142_v14 = vld [vmem:[#allocation7 + $0x20] sm:$0xff]  ;;  %v141_v15 = vld [vmem:[#allocation7 + $0x18] sm:$0xff]  ;;  %v140_v16 = vld [vmem:[#allocation7 + $0x10] sm:$0xff] }
  0x19   :  { %160 = vmatpush.msra.mxu1 %v151_v5  ;;  %v139_v17 = vld [vmem:[#allocation7 + $0x8] sm:$0xff]  ;;  %v138_v18 = vld [vmem:[#allocation7] sm:$0xff]  ;;  %v194_v20 = vld [vmem:[#allocation8 + $0x78] sm:$0xff] }
  0x1a   :  { %v249_v19 = vld [vmem:[%s459_s2] ss:$0 sm:$0xff]  ;;  %v193_v21 = vld [vmem:[#allocation8 + $0x70] sm:$0xff]  ;;  %199 = vmatpush.msra.mxu2 %v194_v20  ;;  %v191_v26 = vld [vmem:[#allocation8 + $0x60] sm:$0xff] }
  0x1b   :  { %161 = vmatpush.msra.mxu1 %v150_v6  ;;  %v192_v24 = vld [vmem:[#allocation8 + $0x68] sm:$0xff]  ;;  %v190_v27 = vld [vmem:[#allocation8 + $0x58] sm:$0xff]  ;;  %v189_v28 = vld [vmem:[#allocation8 + $0x50] sm:$0xff] }
  0x1c   :  { %200 = vmatpush.msra.mxu2 %v193_v21  ;;  %v188_v29 = vld [vmem:[#allocation8 + $0x48] sm:$0xff]  ;;  %v187_v31 = vld [vmem:[#allocation8 + $0x40] sm:$0xff]  ;;  %v186_v33 = vld [vmem:[#allocation8 + $0x38] sm:$0xff] }
  0x1d   :  { %162 = vmatpush.msra.mxu1 %v149_v7  ;;  %v185_v34 = vld [vmem:[#allocation8 + $0x30] sm:$0xff]  ;;  %v184_v35 = vld [vmem:[#allocation8 + $0x28] sm:$0xff]  ;;  %v183_v46 = vld [vmem:[#allocation8 + $0x20] sm:$0xff] }
  0x1e   :  { %201 = vmatpush.msra.mxu2 %v192_v24  ;;  %v182_v47 = vld [vmem:[#allocation8 + $0x18] sm:$0xff]  ;;  %v181_v48 = vld [vmem:[#allocation8 + $0x10] sm:$0xff]  ;;  %v180_v49 = vld [vmem:[#allocation8 + $0x8] sm:$0xff] }
  0x1f   :  { %163 = vmatpush.msra.mxu1 %v148_v8  ;;  %v179_v50 = vld [vmem:[#allocation8] sm:$0xff]  ;;  %v250_v51 = vld [vmem:[%s461_s4] ss:$0 sm:$0xff] }
  0x20   :  { %202 = vmatpush.msra.mxu2 %v191_v26  ;;  %v251_v55 = vld [vmem:[%s463_s6] ss:$0 sm:$0xff] }
  0x21   :  { %164 = vmatpush.msra.mxu1 %v147_v9 }
  0x22   :  { %203 = vmatpush.msra.mxu2 %v190_v27 }
  0x23   :  { %165 = vmatpush.msra.mxu1 %v146_v10 }
  0x24   :  { %204 = vmatpush.msra.mxu2 %v189_v28 }
  0x25   :  { %166 = vmatpush.msra.mxu1 %v145_v11 }
  0x26   :  { %205 = vmatpush.msra.mxu2 %v188_v29 }
  0x27   :  { %167 = vmatpush.msra.mxu1 %v144_v12 }
  0x28   :  { %206 = vmatpush.msra.mxu2 %v187_v31 }
  0x29   :  { %168 = vmatpush.msra.mxu1 %v143_v13 }
  0x2a   :  { %207 = vmatpush.msra.mxu2 %v186_v33 }
  0x2b   :  { %169 = vmatpush.msra.mxu1 %v142_v14 }
  0x2c   :  { %208 = vmatpush.msra.mxu2 %v185_v34 }
  0x2d   :  { %170 = vmatpush.msra.mxu1 %v141_v15 }
  0x2e   :  { %209 = vmatpush.msra.mxu2 %v184_v35 }
  0x2f   :  { %171 = vmatpush.msra.mxu1 %v140_v16 }
  0x30   :  { %210 = vmatpush.msra.mxu2 %v183_v46 }
  0x31   :  { %172 = vmatpush.msra.mxu1 %v139_v17 }
  0x32   :  { %211 = vmatpush.msra.mxu2 %v182_v47 }
  0x33   :  { %173 = vmatpush.msra.mxu1 %v138_v18 }
  0x34   :  { %212 = vmatpush.msra.mxu2 %v181_v48 }
  0x36   :  { %213 = vmatpush.msra.mxu2 %v180_v49 }
  0x38   :  { %214 = vmatpush.msra.mxu2 %v179_v50 }
  0x94   :  { %v116_v22 = vpop.f32.mrf.mxu0 }
  0x95   :  { %v117_v23 = vadd.f32 %v249_v19, %v116_v22 }
  0x97   :  { %v241_v25 = vmul.f32 -1.442695, %v117_v23 }
  0x99   :  { %252 = vpow2.f32 %v241_v25 }
  0x9f   :  { %v253_v30 = vpop.eup %252 }
  0xa0   :  { %v122_v32 = vadd.f32 1.0, %v253_v30 }
  0xa2   :  { %254 = vrcp.f32 %v122_v32  ;;  %v134_v39 = vand.u32 2147483648, %v122_v32  ;;  %v132_v41 = vand.u32 2147483647, %v122_v32  ;;  %vm128_vm2 = vweird.f32 %v122_v32 }
  0xa4   :  { %v135_v43 = vor.u32 1.1754944e-38, %v134_v39  ;;  %vm133_vm4 = vcmp.eq.f32.partialorder %v132_v41, 8.507059e+37 }
  0xa8   :  { %v255_v36 = vpop.eup %254 }
  0xa9   :  { %v124_v37 = vmul.f32 %v255_v36, %v122_v32  ;;  %vm129_vm1 = vweird.f32 %v255_v36 }
  0xaa   :  { %vm130_vm3 = vmor %vm128_vm2, %vm129_vm1 }
  0xab   :  { %v125_v38 = vsub.f32 1.0, %v124_v37 }
  0xad   :  { %v126_v40 = vmul.f32 %v255_v36, %v125_v38 }
  0xaf   :  { %v127_v42 = vadd.f32 %v255_v36, %v126_v40 }
  0xb1   :  { %v131_v44 = vsel %vm130_vm3, %v255_v36, %v127_v42 }
  0xb2   :  { %v136_v45 = vsel %vm133_vm4, %v135_v43, %v131_v44 }
  0xb3   :  { %174 = vmatmul.f32.vlgmr.msra.gmra.mxu1 %v136_v45 }
 0x130   :  { %v175_v52 = vpop.f32.mrf.mxu1 }
 0x131   :  { %v176_v53 = vadd.f32 %v250_v51, %v175_v52 }
 0x133   :  { %256 = vtanh.f32 %v176_v53 }
 0x139   :  { %v257_v54 = vpop.eup %256 }
 0x13a   :  { %215 = vmatmul.f32.vlgmr.msra.gmra.mxu2 %v257_v54 }
 0x1bd   :  { %v216_v56 = vpop.f32.mrf.mxu2 }
 0x1be   :  { %v217_v57 = vadd.f32 %v251_v55, %v216_v56 }
 0x1c0   :  { %v219_v58 = vmax.f32 %v217_v57, 0.0 }
 0x1c2   :  { %220 = vst [vmem:[#allocation10] sm:$0xff] %v219_v58 }
 0x1c3   :  { %231 = dma.vmem_to_hbm [thread:$0]  %s227_s25, 128, %s229_s28, [#allocation4]  }
 0x1c4   :  { %384 = dma.done.wait [#allocation4], 128  }
 0x1c5   :  { %385 = vsyncadd [#allocation4], 4294967168 }
 0x1c6   :  { %236 = vsyncpa [#allocation3], 1 }
 0x1c7   :  { %237 = vsyncpa [#allocation6], 1 }
 0x1c8   :  { %238 = vsyncpa [#allocation9], 1 }
 0x1c9   :  { %239 = vsyncpa [#allocation4], 1 }

</bundles_post_ra>
